<compile_context>
chip_gen: v7x
topology: tpu7x:2x2x1
jax: 0.10.0
libtpu: 0.0.40
codegen_flags: <defaults>
</compile_context>

<pallas_src>
import functools

import jax
import jax.numpy as jnp
from jax import lax
from jax.experimental import pallas as pl
from jax.experimental.pallas import tpu as pltpu


def _mlp_kernel(x_ref,
                w1_ref, b1_ref,
                w2_ref, b2_ref,
                w3_ref, b3_ref,
                w4t_ref, b4_ref,
                o_ref):
    """Fused 3x(Linear+ReLU) + final Linear(->1) on one batch tile.

    Hidden layers: bf16 MXU matmuls, f32 accumulation, f32 bias/ReLU.
    Final layer: NT contraction producing a lane-dense (1, block_b) row.
    """
    x = x_ref[...].astype(jnp.bfloat16)
    h = jnp.dot(x, w1_ref[...], preferred_element_type=jnp.float32) + b1_ref[...]
    h = jnp.maximum(h, 0.0)
    h = jnp.dot(h.astype(jnp.bfloat16), w2_ref[...],
                preferred_element_type=jnp.float32) + b2_ref[...]
    h = jnp.maximum(h, 0.0)
    h = jnp.dot(h.astype(jnp.bfloat16), w3_ref[...],
                preferred_element_type=jnp.float32) + b3_ref[...]
    h = jnp.maximum(h, 0.0)

    # estimator: out[b] = sum_k h[b,k] * w4[k] + b4, laid out with batch on lanes.
    # w4t has shape (1, h3); contract last dims of both operands -> (1, block_b).
    row = lax.dot_general(w4t_ref[...], h, (((1,), (1,)), ((), ())),
                          preferred_element_type=jnp.float32)
    row = row + b4_ref[0, 0]            # b4 scalar lives in SMEM
    o_ref[0] = row.astype(o_ref.dtype)  # (1, block_b) into the (1,1,block_b) block


def _round_up(n, m):
    return ((n + m - 1) // m) * m


def _choose_block_b(batch, max_block=2048, target_tiles=2):
    """Fat batch tiles: aim for `target_tiles` grid steps (keeps both v7x
    TensorCores fed), multiple of 256, capped at 2048 rows."""
    bb = _round_up(max(pl.cdiv(batch, target_tiles), 1), 256)
    return max(256, min(bb, max_block))


def prepare_params(params):
    """One-time conversion to kernel-ready dtypes/layouts (hoisted out of the
    forward path per review): bf16 hidden weights, (1, h3) f32 w4^T, (1,1) b4."""
    w1, b1, w2, b2, w3, b3, w4, b4 = params
    bf = jnp.bfloat16
    return (w1.astype(bf), b1.astype(jnp.float32),
            w2.astype(bf), b2.astype(jnp.float32),
            w3.astype(bf), b3.astype(jnp.float32),
            jnp.transpose(w4).astype(jnp.float32),   # (1, h3)
            b4.reshape(1, 1).astype(jnp.float32))    # scalar, goes to SMEM


@functools.partial(jax.jit, static_argnames=("block_b",))
def mlp_forward(x, prepared_params, block_b=None):
    """x: (B, ndim[0]) float32, prepared_params from prepare_params() -> (B, 1)."""
    w1b, b1, w2b, b2, w3b, b3, w4t, b4s = prepared_params
    B, d_in = x.shape
    if block_b is None:
        block_b = _choose_block_b(B)
    num_tiles = pl.cdiv(B, block_b)

    def full_spec(a):  # weights / biases are resident for every batch tile
        return pl.BlockSpec(a.shape, lambda i: (0, 0))

    out = pl.pallas_call(
        _mlp_kernel,
        out_shape=jax.ShapeDtypeStruct((num_tiles, 1, block_b), jnp.float32),
        grid_spec=pltpu.PrefetchScalarGridSpec(
            num_scalar_prefetch=0,
            grid=(num_tiles,),
            in_specs=[
                pl.BlockSpec((block_b, d_in), lambda i: (i, 0)),
                full_spec(w1b), full_spec(b1),
                full_spec(w2b), full_spec(b2),
                full_spec(w3b), full_spec(b3),
                full_spec(w4t),
                pl.BlockSpec(memory_space=pltpu.MemorySpace.SMEM),
            ],
            out_specs=pl.BlockSpec((1, 1, block_b), lambda i: (i, 0, 0)),
        ),
        compiler_params=pltpu.CompilerParams(
            dimension_semantics=("parallel",)),
    )(x, w1b, b1, w2b, b2, w3b, b3, w4t, b4s)

    # Lane-dense (num_tiles, 1, block_b) -> (B, 1); padded tail rows are dropped.
    return out.reshape(num_tiles * block_b, 1)[:B]


def init_mlp_params(key, ndim):
    """Deterministic init matching torch.nn.Linear shapes.

    ndim = (d_in, h1, h2, h3); layers: d_in->h1->h2->h3->1.
    Weights stored as (in, out); biases as (1, out).
    """
    dims = list(ndim) + [1]
    params = []
    for i in range(len(dims) - 1):
        fan_in, fan_out = dims[i], dims[i + 1]
        key, kw, kb = jax.random.split(key, 3)
        bound = 1.0 / jnp.sqrt(jnp.float32(fan_in))
        w = jax.random.uniform(kw, (fan_in, fan_out), jnp.float32, -bound, bound)
        b = jax.random.uniform(kb, (1, fan_out), jnp.float32, -bound, bound)
        params += [w, b]
    return tuple(params)


def mlp_reference_f32(x, params):
    """Plain-JAX full-f32 reference."""
    w1, b1, w2, b2, w3, b3, w4, b4 = params
    h = jnp.maximum(x @ w1 + b1, 0.0)
    h = jnp.maximum(h @ w2 + b2, 0.0)
    h = jnp.maximum(h @ w3 + b3, 0.0)
    return h @ w4 + b4


def mlp_reference_bf16(x, params):
    """Plain-JAX reference with the kernel's precision policy (bf16 in, f32 acc)."""
    w1, b1, w2, b2, w3, b3, w4, b4 = params
    bf = jnp.bfloat16
    h = jnp.maximum(jnp.dot(x.astype(bf), w1.astype(bf),
                            preferred_element_type=jnp.float32) + b1, 0.0)
    h = jnp.maximum(jnp.dot(h.astype(bf), w2.astype(bf),
                            preferred_element_type=jnp.float32) + b2, 0.0)
    h = jnp.maximum(jnp.dot(h.astype(bf), w3.astype(bf),
                            preferred_element_type=jnp.float32) + b3, 0.0)
    return jnp.dot(h, w4, preferred_element_type=jnp.float32) + b4


if __name__ == "__main__":
    key = jax.random.PRNGKey(0)
    ndim = (32, 64, 64, 32)   # (input_dim, h1, h2, h3); estimator maps h3 -> 1

    key, kp = jax.random.split(key)
    params = init_mlp_params(kp, ndim)
    prepped = prepare_params(params)   # hoisted one-time weight conversion

    # 512: two full 256-row tiles (auto block_b); 384: ragged second tile;
    # 64: single ragged tile (rows past B are garbage-fed but dropped by [:B]).
    for batch in (512, 384, 64):
        key, kxi = jax.random.split(key)
        x = jax.random.normal(kxi, (batch, ndim[0]), jnp.float32)

        y = mlp_forward(x, prepped)            # adaptive block_b
        y = jax.block_until_ready(y)
        assert y.shape == (batch, 1), y.shape

        y_bf16 = mlp_reference_bf16(x, params)
        y_f32 = mlp_reference_f32(x, params)
        assert jnp.allclose(y, y_bf16, atol=1e-2, rtol=1e-2), \
            "mismatch vs bf16-precision reference"
        assert jnp.allclose(y, y_f32, atol=5e-2, rtol=5e-2), \
            "mismatch vs f32 reference"

        # Explicit fat single tile (v5e/v6e style): same numbers, fewer grid steps.
        y_fat = jax.block_until_ready(mlp_forward(x, prepped, block_b=1024))
        assert jnp.allclose(y, y_fat, atol=1e-5, rtol=1e-5), "block_b mismatch"

    # TODO(synk): training utilities (fit / Yogi optimizer / DataLoader /
    # train_val_split) are host-side and intentionally not implemented as kernels.
    print("KERNEL_OK")
</pallas_src>

<mosaic_0001>
module attributes {stable_mosaic.version = 11 : i64} {
  func.func @_mlp_kernel(%arg0: i32, %arg1: memref<256x32xf32, #tpu.memory_space<vmem>>, %arg2: memref<32x64xbf16, #tpu.memory_space<vmem>>, %arg3: memref<1x64xf32, #tpu.memory_space<vmem>>, %arg4: memref<64x64xbf16, #tpu.memory_space<vmem>>, %arg5: memref<1x64xf32, #tpu.memory_space<vmem>>, %arg6: memref<64x32xbf16, #tpu.memory_space<vmem>>, %arg7: memref<1x32xf32, #tpu.memory_space<vmem>>, %arg8: memref<1x32xf32, #tpu.memory_space<vmem>>, %arg9: memref<1x1xf32, #tpu.memory_space<smem>>, %arg10: memref<1x1x256xf32, #tpu.memory_space<vmem>>) attributes {dimension_semantics = [#tpu.dimension_semantics<parallel>], iteration_bounds = array<i64: 2>, scalar_prefetch = 0 : i64, scratch_operands = 0 : i64, tpu.core_type = #tpu.core_type<tc>, window_params = [{transform_indices = @transform_0, window_bounds = array<i64: 256, 32>}, {pipeline_mode = #tpu.pipeline_mode<synchronous>, transform_indices = @transform_1, window_bounds = array<i64: 32, 64>}, {pipeline_mode = #tpu.pipeline_mode<synchronous>, transform_indices = @transform_2, window_bounds = array<i64: 1, 64>}, {pipeline_mode = #tpu.pipeline_mode<synchronous>, transform_indices = @transform_3, window_bounds = array<i64: 64, 64>}, {pipeline_mode = #tpu.pipeline_mode<synchronous>, transform_indices = @transform_4, window_bounds = array<i64: 1, 64>}, {pipeline_mode = #tpu.pipeline_mode<synchronous>, transform_indices = @transform_5, window_bounds = array<i64: 64, 32>}, {pipeline_mode = #tpu.pipeline_mode<synchronous>, transform_indices = @transform_6, window_bounds = array<i64: 1, 32>}, {pipeline_mode = #tpu.pipeline_mode<synchronous>, transform_indices = @transform_7, window_bounds = array<i64: 1, 32>}, {transform_indices = @transform_8, window_bounds = array<i64: 1, 1>}, {transform_indices = @transform_9, window_bounds = array<i64: 1, 1, 256>}]} {
    %c0 = arith.constant 0 : index
    %c0_0 = arith.constant 0 : index
    %0 = vector.load %arg1[%c0, %c0_0] : memref<256x32xf32, #tpu.memory_space<vmem>>, vector<256x32xf32>
    %1 = arith.truncf %0 : vector<256x32xf32> to vector<256x32xbf16>
    %c0_1 = arith.constant 0 : index
    %c0_2 = arith.constant 0 : index
    %2 = vector.load %arg2[%c0_1, %c0_2] : memref<32x64xbf16, #tpu.memory_space<vmem>>, vector<32x64xbf16>
    %cst = arith.constant dense<0.000000e+00> : vector<256x64xf32>
    %3 = tpu.matmul %1, %2, %cst {dimension_numbers = #tpu.dot_dimension_numbers<[1], [0], [0], [1], [0, 0, 1, 1], [], []>} : vector<256x32xbf16>, vector<32x64xbf16>, vector<256x64xf32> -> vector<256x64xf32>
    %c0_3 = arith.constant 0 : index
    %c0_4 = arith.constant 0 : index
    %4 = vector.load %arg3[%c0_3, %c0_4] : memref<1x64xf32, #tpu.memory_space<vmem>>, vector<1x64xf32>
    %5 = vector.broadcast %4 : vector<1x64xf32> to vector<256x64xf32>
    %6 = arith.addf %3, %5 : vector<256x64xf32>
    %cst_5 = arith.constant 0.000000e+00 : f32
    %7 = vector.broadcast %cst_5 : f32 to vector<256x64xf32>
    %8 = arith.maximumf %6, %7 : vector<256x64xf32>
    %9 = arith.truncf %8 : vector<256x64xf32> to vector<256x64xbf16>
    %c0_6 = arith.constant 0 : index
    %c0_7 = arith.constant 0 : index
    %10 = vector.load %arg4[%c0_6, %c0_7] : memref<64x64xbf16, #tpu.memory_space<vmem>>, vector<64x64xbf16>
    %cst_8 = arith.constant dense<0.000000e+00> : vector<256x64xf32>
    %11 = tpu.matmul %9, %10, %cst_8 {dimension_numbers = #tpu.dot_dimension_numbers<[1], [0], [0], [1], [0, 0, 1, 1], [], []>} : vector<256x64xbf16>, vector<64x64xbf16>, vector<256x64xf32> -> vector<256x64xf32>
    %c0_9 = arith.constant 0 : index
    %c0_10 = arith.constant 0 : index
    %12 = vector.load %arg5[%c0_9, %c0_10] : memref<1x64xf32, #tpu.memory_space<vmem>>, vector<1x64xf32>
    %13 = vector.broadcast %12 : vector<1x64xf32> to vector<256x64xf32>
    %14 = arith.addf %11, %13 : vector<256x64xf32>
    %cst_11 = arith.constant 0.000000e+00 : f32
    %15 = vector.broadcast %cst_11 : f32 to vector<256x64xf32>
    %16 = arith.maximumf %14, %15 : vector<256x64xf32>
    %17 = arith.truncf %16 : vector<256x64xf32> to vector<256x64xbf16>
    %c0_12 = arith.constant 0 : index
    %c0_13 = arith.constant 0 : index
    %18 = vector.load %arg6[%c0_12, %c0_13] : memref<64x32xbf16, #tpu.memory_space<vmem>>, vector<64x32xbf16>
    %cst_14 = arith.constant dense<0.000000e+00> : vector<256x32xf32>
    %19 = tpu.matmul %17, %18, %cst_14 {dimension_numbers = #tpu.dot_dimension_numbers<[1], [0], [0], [1], [0, 0, 1, 1], [], []>} : vector<256x64xbf16>, vector<64x32xbf16>, vector<256x32xf32> -> vector<256x32xf32>
    %c0_15 = arith.constant 0 : index
    %c0_16 = arith.constant 0 : index
    %20 = vector.load %arg7[%c0_15, %c0_16] : memref<1x32xf32, #tpu.memory_space<vmem>>, vector<1x32xf32>
    %21 = vector.broadcast %20 : vector<1x32xf32> to vector<256x32xf32>
    %22 = arith.addf %19, %21 : vector<256x32xf32>
    %cst_17 = arith.constant 0.000000e+00 : f32
    %23 = vector.broadcast %cst_17 : f32 to vector<256x32xf32>
    %24 = arith.maximumf %22, %23 : vector<256x32xf32>
    %c0_18 = arith.constant 0 : index
    %c0_19 = arith.constant 0 : index
    %25 = vector.load %arg8[%c0_18, %c0_19] : memref<1x32xf32, #tpu.memory_space<vmem>>, vector<1x32xf32>
    %cst_20 = arith.constant dense<0.000000e+00> : vector<1x256xf32>
    %26 = tpu.matmul %25, %24, %cst_20 {dimension_numbers = #tpu.dot_dimension_numbers<[1], [1], [0], [0], [0, 0, 1, 0], [], []>} : vector<1x32xf32>, vector<256x32xf32>, vector<1x256xf32> -> vector<1x256xf32>
    %c0_21 = arith.constant 0 : index
    %c0_22 = arith.constant 0 : index
    %27 = memref.load %arg9[%c0_21, %c0_22] : memref<1x1xf32, #tpu.memory_space<smem>>
    %28 = vector.broadcast %27 : f32 to vector<1x256xf32>
    %29 = arith.addf %26, %28 : vector<1x256xf32>
    %c0_23 = arith.constant 0 : index
    %c0_24 = arith.constant 0 : index
    %c0_25 = arith.constant 0 : index
    %30 = vector.load %arg10[%c0_23, %c0_24, %c0_25] : memref<1x1x256xf32, #tpu.memory_space<vmem>>, vector<1x1x256xf32>
    %31 = vector.shape_cast %30 : vector<1x1x256xf32> to vector<1x256xf32>
    %32 = vector.shape_cast %29 : vector<1x256xf32> to vector<1x1x256xf32>
    tpu.vector_store %arg10[%c0_23, %c0_24, %c0_25], %32 {strides = array<i32>} : memref<1x1x256xf32, #tpu.memory_space<vmem>>, vector<1x1x256xf32>,
    return
  }
  func.func @transform_0(%arg0: i32) -> (i32, i32) {
    %c0_i32 = arith.constant 0 : i32
    %c0_i32_0 = arith.constant 0 : i32
    return %arg0, %c0_i32 : i32, i32
  }
  func.func @transform_1(%arg0: i32) -> (i32, i32) {
    %c0_i32 = arith.constant 0 : i32
    %c0_i32_0 = arith.constant 0 : i32
    %c0_i32_1 = arith.constant 0 : i32
    return %c0_i32, %c0_i32_0 : i32, i32
  }
  func.func @transform_2(%arg0: i32) -> (i32, i32) {
    %c0_i32 = arith.constant 0 : i32
    %c0_i32_0 = arith.constant 0 : i32
    %c0_i32_1 = arith.constant 0 : i32
    return %c0_i32, %c0_i32_0 : i32, i32
  }
  func.func @transform_3(%arg0: i32) -> (i32, i32) {
    %c0_i32 = arith.constant 0 : i32
    %c0_i32_0 = arith.constant 0 : i32
    %c0_i32_1 = arith.constant 0 : i32
    return %c0_i32, %c0_i32_0 : i32, i32
  }
  func.func @transform_4(%arg0: i32) -> (i32, i32) {
    %c0_i32 = arith.constant 0 : i32
    %c0_i32_0 = arith.constant 0 : i32
    %c0_i32_1 = arith.constant 0 : i32
    return %c0_i32, %c0_i32_0 : i32, i32
  }
  func.func @transform_5(%arg0: i32) -> (i32, i32) {
    %c0_i32 = arith.constant 0 : i32
    %c0_i32_0 = arith.constant 0 : i32
    %c0_i32_1 = arith.constant 0 : i32
    return %c0_i32, %c0_i32_0 : i32, i32
  }
  func.func @transform_6(%arg0: i32) -> (i32, i32) {
    %c0_i32 = arith.constant 0 : i32
    %c0_i32_0 = arith.constant 0 : i32
    %c0_i32_1 = arith.constant 0 : i32
    return %c0_i32, %c0_i32_0 : i32, i32
  }
  func.func @transform_7(%arg0: i32) -> (i32, i32) {
    %c0_i32 = arith.constant 0 : i32
    %c0_i32_0 = arith.constant 0 : i32
    %c0_i32_1 = arith.constant 0 : i32
    return %c0_i32, %c0_i32_0 : i32, i32
  }
  func.func @transform_8(%arg0: i32) -> (i32, i32) {
    %c0_i32 = arith.constant 0 : i32
    %c0_i32_0 = arith.constant 0 : i32
    %c0_i32_1 = arith.constant 0 : i32
    return %c0_i32, %c0_i32_0 : i32, i32
  }
  func.func @transform_9(%arg0: i32) -> (i32, i32, i32) {
    %c0_i32 = arith.constant 0 : i32
    %c0_i32_0 = arith.constant 0 : i32
    %c0_i32_1 = arith.constant 0 : i32
    return %arg0, %c0_i32, %c0_i32_0 : i32, i32, i32
  }
}

</mosaic_0001>

<bundles_post_ra>
// kernel: mlp_forward.1
= control target key start
LH: loop header
LB: loop body
LE: loop exit
PB: predicated region body
PF: predicated region fallthrough
CT: control target
= control target key end

     0   :  { %s2446_s0 = inlined_call_operand.vmem [shape: f32[512,32], index: 0, kind: input, shape index: {}]   ;;  %s2447_s1 = inlined_call_operand.vmem [shape: bf16[32,64], index: 1, kind: input, shape index: {}]   ;;  %s2448_s2 = inlined_call_operand.vmem [shape: f32[1,64], index: 2, kind: input, shape index: {}]   ;;  %s2449_s3 = inlined_call_operand.vmem [shape: bf16[64,64], index: 3, kind: input, shape index: {}]   ;;  %s2450_s4 = inlined_call_operand.vmem [shape: f32[1,64], index: 4, kind: input, shape index: {}]   ;;  %s2451_s5 = inlined_call_operand.vmem [shape: bf16[64,32], index: 5, kind: input, shape index: {}]   ;;  %s2452_s6 = inlined_call_operand.vmem [shape: f32[1,32], index: 6, kind: input, shape index: {}]   ;;  %s2453_s7 = inlined_call_operand.vmem [shape: f32[1,32], index: 7, kind: input, shape index: {}]   ;;  %s2454_s8 = inlined_call_operand.<no memory space> [shape: f32[1,1], index: 8, kind: input, shape index: {}]   ;;  %s2455_s9 = inlined_call_operand.hbm [shape: f32[2,1,256], index: 9, kind: output, shape index: {}]  }
   0x1   :  { %14 = sst [smem:[#allocation2]] %s2454_s8 }
   0x2   :  { %15 = vsyncpa [#allocation4], 0 }
   0x3   :  { %17 = vsyncpa [#allocation4 + $0x1], 0  ;;  %s2047_s11 = smov 0   ;;  %s2049_s12 = smov 0  }
   0x4   :  { %s2051_s13 = smov 0   ;;  %s2053_s14 = smov 0  }
   0x5 LB: > { %s1510_s8 = sadd.s32 4294967295, %s1990_s14   ;;  %s1511_s15 = sadd.s32 4294967294, %s1990_s14   ;;  %s1990_s14 = sphi %s2053_s14, %s2463_s14   ;;  %s1986_s13 = sphi %s2051_s13, %s2462_s13   ;;  %s1982_s12 = sphi %s2049_s12, %s2461_s12   ;;  %s1978_s11 = sphi %s2047_s11, %s2460_s11  }
   0x6   : > { %s2070_s16 = sadd.s32 1, %s1990_s14   ;;  %s224_s17 = sadd.s32 1, %s1986_s13 }
   0x7   : > { %s221_s18 = ssub.s32 %s1990_s14, %s2070_s16  ;;  %p234_p0 = scmp.ne.s32.totalorder %s1986_s13, %s1982_s12 }
   0x8   : > { %p222_p1 = scmp.eq.s32.totalorder %s221_s18, 0  ;;  %p235_p2 = scmp.eq.s32.totalorder %s1510_s8, 1 }
   0x9   : > { %p240_p3 = scmp.ne.s32.totalorder %s1982_s12, %s1978_s11  ;;  %p241_p4 = scmp.eq.s32.totalorder %s1511_s15, 1 }
   0xa   : > { %s2080_s19 = scalar_select %p222_p1, %s1986_s13, %s224_s17  }
   0xb   : > { %p2082_p5 = por %p235_p2, %p234_p0  ;;  %p2086_p6 = por %p241_p4, %p240_p3 }
   0xc   : > { %p1514_p7 = scmp.ge.s32.totalorder %s1990_s14, 1  ;;  %p292_p8 = scmp.lt.s32.totalorder %s1990_s14, 3 }
   0xe   : > { %p293_p9 = pnand %p1514_p7, %p292_p8 }
   0xf   : > { %v1918_v0 = vld [vmem:[%s2447_s1] sm:$0xff] (!%p293_p9)   ;;  %s2095_s24 = sshll.u32 (!%p293_p9), %s1510_s8, 5  ;;  %v1919_v1 = vld [vmem:[%s2447_s1 + $0x8] sm:$0xff] (!%p293_p9)   ;;  %vm406_vm0 = vcmask (!%p293_p9), 261120   ;;  %v1922_v36 = vld [vmem:[%s2449_s3 + $0x10] sm:$0xff] (!%p293_p9)   ;;  %vm703_vm1 = vcmask (!%p293_p9), 523264  }
  0x10   : > { %296 = sbr.rel (%p293_p9) target bundleno = 1027 (0x403), region = 56  ;;  %p329_p10 = scmp.lt.s32.totalorder (!%p293_p9), %s2095_s24, 63  ;;  %1710 = vmatprep.subr.bf16.mxu0 (!%p293_p9), %v1918_v0  ;;  %1874 = vmatprep.subr.bf16.mxu1 (!%p293_p9), %v1918_v0  ;;  %v1920_v2 = vld [vmem:[%s2449_s3] sm:$0xff] (!%p293_p9)   ;;  %v1921_v27 = vld [vmem:[%s2449_s3 + $0x8] sm:$0xff] (!%p293_p9)   ;;  %v1923_v53 = vld [vmem:[%s2449_s3 + $0x18] sm:$0xff] (!%p293_p9)  }
  0x11   : > { %1711 = vmatpush3.bf16.msra.mxu0 (!%p293_p9), %v1918_v0  ;;  %1876 = vmatpush3.bf16.msra.mxu1 (!%p293_p9), %v1918_v0  ;;  %v1924_v54 = vld [vmem:[%s2451_s5] sm:$0xff] (!%p293_p9)   ;;  %v1925_v55 = vld [vmem:[%s2451_s5 + $0x8] sm:$0xff] (!%p293_p9)   ;;  %v1926_v56 = vld [vmem:[%s2451_s5 + $0x10] sm:$0xff] (!%p293_p9)   ;;  %s325_s10 = sand.u32 (!%p293_p9), 1, %s1982_s12   ;;  %s2404_s23 = scalar_lea.hbm (!%p293_p9), %s2455_s9, %s2095_s24 }
  0x12   : > { %1712 = vmatprep.subr.bf16.mxu0 (!%p293_p9), %v1919_v1  ;;  %1875 = vmatprep.subr.bf16.mxu1 (!%p293_p9), %v1919_v1  ;;  %v2179_v57 = vld [vmem:[%s2448_s2] ss:$0 sm:$0xff] (!%p293_p9)  ;;  %vm2341_vm2 = vmpackc.low (!%p293_p9), %vm406_vm0, %vm406_vm0  ;;  %s1515_s8 = sshll.u32 (!%p293_p9), %s325_s10, 1  ;;  %s1438_s25 = scalar_lea.sflag (!%p293_p9), [#allocation4], %s325_s10 }
  0x15   : > { %1713 = vmatpush3.bf16.msra.mxu0 (!%p293_p9), %v1919_v1  ;;  %1877 = vmatpush3.bf16.msra.mxu1 (!%p293_p9), %v1919_v1 }
  0x16   : > { %1746 = vmatprep.subr.bf16.mxu1 (!%p293_p9), %v1920_v2  ;;  %1786 = vmatprep.subr.bf16.mxu0 (!%p293_p9), %v1924_v54 }
  0x17   : > { %s330_s27 = scalar_select %p329_p10, %s2095_s24, 63 }
  0x19   : > { %s1517_s30 = sshll.u32 %s330_s27, 3  ;;  %s1993_s27 = smov [#allocation3]  }
  0x1a   : > { %s2108_s15 = scalar_lea.vmem %s2446_s0, %s1517_s30  ;;  %s1242_s30 = sld [smem:[#allocation2]] }
  0x1b   : > { %v335_v3 = vld [vmem:[%s2108_s15] sm:$0xff]  ;;  %v336_v4 = vld [vmem:[%s2108_s15 + $0x8] sm:$0xff]  ;;  %v337_v5 = vld [vmem:[%s2108_s15 + $0x10] sm:$0xff]  ;;  %s1932_s28 = sshll.u32 %s1993_s27, 4  ;;  %s1933_s28 = int_to_ptr.vmem [resolvable:$false] %s1932_s28 }
  0x1c   : > { %v367_v6 = vpack.c.bf16 %v336_v4, %v335_v3  ;;  %v338_v7 = vld [vmem:[%s2108_s15 + $0x18] sm:$0xff]  ;;  %v339_v8 = vld [vmem:[%s2108_s15 + $0x20] sm:$0xff]  ;;  %v340_v9 = vld [vmem:[%s2108_s15 + $0x28] sm:$0xff]  ;;  %s1934_s29 = scalar_lea.vmem %s1933_s28, 64 }
  0x1d   : > { %v368_v10 = vpack.c.bf16 %v338_v7, %v337_v5  ;;  %v369_v11 = vpack.c.bf16 %v340_v9, %v339_v8  ;;  %v341_v12 = vld [vmem:[%s2108_s15 + $0x30] sm:$0xff]  ;;  %v342_v13 = vld [vmem:[%s2108_s15 + $0x38] sm:$0xff]  ;;  %v343_v14 = vld [vmem:[%s2108_s15 + $0x40] sm:$0xff] }
  0x1e   : > { %1714 = vmatprep.mubr.msk.bf16.mxu0 %vm406_vm0, %v367_v6  ;;  %v344_v15 = vld [vmem:[%s2108_s15 + $0x48] sm:$0xff]  ;;  %v355_v16 = vld [vmem:[%s2108_s15 + $0xa0] sm:$0xff]  ;;  %v357_v18 = vld [vmem:[%s2108_s15 + $0xb0] sm:$0xff]  ;;  %v370_v20 = vpack.c.bf16 %v342_v13, %v341_v12 }
  0x1f   : > { %1715 = vmatmul.mubr.msk.bf16.vlgmr.msra.gmra.mrb[0].mxu0 %vm406_vm0, %v368_v10  ;;  %v356_v17 = vld [vmem:[%s2108_s15 + $0xa8] sm:$0xff]  ;;  %v358_v19 = vld [vmem:[%s2108_s15 + $0xb8] sm:$0xff]  ;;  %v359_v23 = vld [vmem:[%s2108_s15 + $0xc0] sm:$0xff]  ;;  %v371_v25 = vpack.c.bf16 %v344_v15, %v343_v14 }
  0x20   : > { %1718 = vmatprep.mubr.msk.bf16.mxu0 %vm406_vm0, %v369_v11  ;;  %v377_v21 = vpack.c.bf16 %v356_v17, %v355_v16  ;;  %v378_v22 = vpack.c.bf16 %v358_v19, %v357_v18  ;;  %v360_v24 = vld [vmem:[%s2108_s15 + $0xc8] sm:$0xff]  ;;  %v345_v28 = vld [vmem:[%s2108_s15 + $0x50] sm:$0xff]  ;;  %v362_v30 = vld [vmem:[%s2108_s15 + $0xd8] sm:$0xff]  ;;  %1787 = vmatpush3.bf16.msra.mxu0 %v1924_v54 }
  0x21   : > { %v379_v26 = vpack.c.bf16 %v360_v24, %v359_v23  ;;  %v361_v29 = vld [vmem:[%s2108_s15 + $0xd0] sm:$0xff]  ;;  %v346_v31 = vld [vmem:[%s2108_s15 + $0x58] sm:$0xff]  ;;  %v363_v32 = vld [vmem:[%s2108_s15 + $0xe0] sm:$0xff]  ;;  %1788 = vmatprep.subr.bf16.mxu0 %v1925_v55 }
  0x22   : > { %1734 = vmatprep.mubr.msk.bf16.mxu1 %vm406_vm0, %v377_v21  ;;  %v364_v33 = vld [vmem:[%s2108_s15 + $0xe8] sm:$0xff]  ;;  %v347_v34 = vld [vmem:[%s2108_s15 + $0x60] sm:$0xff]  ;;  %v380_v37 = vpack.c.bf16 %v362_v30, %v361_v29  ;;  %v372_v38 = vpack.c.bf16 %v346_v31, %v345_v28  ;;  %v365_v41 = vld [vmem:[%s2108_s15 + $0xf0] sm:$0xff] }
  0x23   : > { %1735 = vmatmul.mubr.msk.bf16.vlgmr.msra.gmra.mrb[0].mxu1 %vm406_vm0, %v378_v22  ;;  %v348_v35 = vld [vmem:[%s2108_s15 + $0x68] sm:$0xff]  ;;  %v381_v39 = vpack.c.bf16 %v364_v33, %v363_v32  ;;  %v366_v42 = vld [vmem:[%s2108_s15 + $0xf8] sm:$0xff]  ;;  %v349_v43 = vld [vmem:[%s2108_s15 + $0x70] sm:$0xff] }
  0x24   : > { %1738 = vmatprep.mubr.msk.bf16.mxu1 %vm406_vm0, %v379_v26  ;;  %1747 = vmatpush3.bf16.msra.mxu1 %v1920_v2  ;;  %v373_v40 = vpack.c.bf16 %v348_v35, %v347_v34  ;;  %v350_v44 = vld [vmem:[%s2108_s15 + $0x78] sm:$0xff]  ;;  %v351_v45 = vld [vmem:[%s2108_s15 + $0x80] sm:$0xff]  ;;  %v352_v46 = vld [vmem:[%s2108_s15 + $0x88] sm:$0xff]  ;;  %v382_v47 = vpack.c.bf16 %v366_v42, %v365_v41 }
  0x25   : > { %1748 = vmatprep.subr.bf16.mxu1 %v1921_v27  ;;  %v374_v48 = vpack.c.bf16 %v350_v44, %v349_v43  ;;  %v375_v49 = vpack.c.bf16 %v352_v46, %v351_v45  ;;  %v353_v50 = vld [vmem:[%s2108_s15 + $0x90] sm:$0xff]  ;;  %v354_v51 = vld [vmem:[%s2108_s15 + $0x98] sm:$0xff]  ;;  %1789 = vmatpush3.bf16.msra.mxu0 %v1925_v55  ;;  %s327_s15 = scalar_lea.vmem [#allocation3], %s1515_s8 }
  0x26   : > { %v376_v52 = vpack.c.bf16 %v354_v51, %v353_v50  ;;  %1790 = vmatprep.subr.bf16.mxu0 %v1926_v56  ;;  %s1452_s17 = sshll.u32 %s327_s15, 4  ;;  %s2406_s17 = int_to_ptr.vmem [resolvable:$true] %s1452_s17 }
  0x27   : > { %1719 = vmatmul.mubr.msk.bf16.gmra.mrb[4].mxu0 %vm406_vm0, %v370_v20  ;;  %s1928_s26 = scalar_lea.vmem %s2406_s17, 32  ;;  %p1935_p0 = scmp.lt.s32.totalorder %s2406_s17, %s1933_s28 }
  0x28   : > { %1722 = vmatprep.mubr.msk.bf16.mxu0 %vm406_vm0, %v371_v25  ;;  %1749 = vmatpush3.bf16.msra.mxu1 %v1921_v27  ;;  %p1929_p11 = scmp.ne.s32.totalorder %s2406_s17, %s1928_s26  ;;  %p1936_p1 = scmp.lt.s32.totalorder %s1934_s29, %s1928_s26 }
  0x29   : > { %1750 = vmatprep.subr.bf16.mxu1 %v1922_v36  ;;  %1791 = vmatpush3.bf16.msra.mxu0 %v1926_v56 }
  0x2a   : > { %p1930_p12 = pnand %p1929_p11, %p2082_p5  ;;  %p1937_p2 = por %p1936_p1, %p1935_p0 }
  0x2b   : > { %1739 = vmatmul.mubr.msk.bf16.gmra.mrb[4].mxu1 %vm406_vm0, %v380_v37 }
  0x2c   : > { %1742 = vmatprep.mubr.msk.bf16.mxu1 %vm406_vm0, %v381_v39  ;;  %1751 = vmatpush3.bf16.msra.mxu1 %v1922_v36  ;;  %p1931_p13 = pneg %p1930_p12 }
  0x2d   : > { %1752 = vmatprep.subr.bf16.mxu1 %v1923_v53 }
  0x2e   : > { %p1938_p3 = pnand %p1937_p2, %p1931_p13 }
  0x2f   : > { %1723 = vmatmul.mubr.msk.bf16.gmra.mrb[8].mxu0 %vm406_vm0, %v372_v38 }
  0x30   : > { %1726 = vmatprep.mubr.msk.bf16.mxu0 %vm406_vm0, %v373_v40  ;;  %1753 = vmatpush3.bf16.msra.mxu1 %v1923_v53 }
  0x33   : > { %1743 = vmatmul.mubr.msk.bf16.gmra.mrb[8].mxu1 %vm406_vm0, %v382_v47 }
  0x37   : > { %1727 = vmatmul.mubr.msk.bf16.gmra.mrb[12].mxu0 %vm406_vm0, %v374_v48 }
  0x38   : > { %1730 = vmatprep.mubr.msk.bf16.mxu0 %vm406_vm0, %v375_v49 }
  0x3f   : > { %1731 = vmatmul.mubr.msk.bf16.gmra.mrb[16].mxu0 %vm406_vm0, %v376_v52 }
  0xf2   : > { %v1716_v58 = vpop.f32.mrb[0].mxu0 }
  0xf3   : > { %v498_v59 = vadd.f32 %v1716_v58, %v2179_v57  ;;  %v489_v60 = vpop.f32.mrb[1].mxu0 }
  0xf4   : > { %v490_v61 = vadd.f32 %v2179_v57, %v489_v60  ;;  %v1717_v62 = vpop.f32.mrb[2].mxu0 }
  0xf5   : > { %v501_v63 = vadd.f32 %v1717_v62, %v2179_v57  ;;  %v492_v0 = vpop.f32.mrb[3].mxu0  ;;  %v618_v2 = vmax.f32 %v498_v59, 0.0 }
  0xf6   : > { %v493_v1 = vadd.f32 %v2179_v57, %v492_v0  ;;  %v616_v4 = vmax.f32 %v490_v61, 0.0  ;;  %v1736_v7 = vpop.f32.mrb[0].mxu1 }
  0xf7   : > { %v619_v3 = vmax.f32 %v501_v63, 0.0  ;;  %v578_v10 = vadd.f32 %v1736_v7, %v2179_v57  ;;  %v569_v11 = vpop.f32.mrb[1].mxu1 }
  0xf8   : > { %v617_v5 = vmax.f32 %v493_v1, 0.0  ;;  %v570_v14 = vadd.f32 %v2179_v57, %v569_v11  ;;  %v1737_v15 = vpop.f32.mrb[2].mxu1 }
  0xf9   : > { %v649_v6 = vpack.c.bf16 %v619_v3, %v618_v2  ;;  %v638_v18 = vmax.f32 %v578_v10, 0.0  ;;  %v581_v19 = vadd.f32 %v1737_v15, %v2179_v57  ;;  %v572_v20 = vpop.f32.mrb[3].mxu1 }
  0xfa   : > { %v648_v8 = vpack.c.bf16 %v617_v5, %v616_v4  ;;  %v1720_v9 = vpop.f32.mrb[4].mxu0  ;;  %v636_v23 = vmax.f32 %v570_v14, 0.0  ;;  %v573_v24 = vadd.f32 %v2179_v57, %v572_v20 }
  0xfb   : > { %v514_v12 = vadd.f32 %v1720_v9, %v2179_v57  ;;  %v505_v13 = vpop.f32.mrb[5].mxu0  ;;  %v639_v26 = vmax.f32 %v581_v19, 0.0 }
  0xfc   : > { %v506_v16 = vadd.f32 %v2179_v57, %v505_v13  ;;  %v1721_v17 = vpop.f32.mrb[6].mxu0  ;;  %1754 = vmatprep.mubr.msk.bf16.mxu1 %vm703_vm1, %v648_v8  ;;  %v637_v29 = vmax.f32 %v573_v24, 0.0 }
  0xfd   : > { %v517_v21 = vadd.f32 %v1721_v17, %v2179_v57  ;;  %v508_v22 = vpop.f32.mrb[7].mxu0  ;;  %1755 = vmatmul.mubr.msk.bf16.vlgmr.msra.gmra.mrb[12].mxu1 %vm703_vm1, %v649_v6  ;;  %v622_v27 = vmax.f32 %v514_v12, 0.0  ;;  %v2195_v32 = vpack.c.bf16 %v639_v26, %v638_v18 }
  0xfe   : > { %v509_v25 = vadd.f32 %v2179_v57, %v508_v22  ;;  %v620_v30 = vmax.f32 %v506_v16, 0.0  ;;  %v2197_v34 = vpack.c.bf16 %v637_v29, %v636_v23  ;;  %v1740_v35 = vpop.f32.mrb[4].mxu1 }
  0xff   : > { %v623_v28 = vmax.f32 %v517_v21, 0.0  ;;  %v594_v38 = vadd.f32 %v1740_v35, %v2179_v57  ;;  %v585_v39 = vpop.f32.mrb[5].mxu1 }
 0x100   : > { %v621_v31 = vmax.f32 %v509_v25, 0.0  ;;  %v586_v42 = vadd.f32 %v2179_v57, %v585_v39  ;;  %v1741_v43 = vpop.f32.mrb[6].mxu1 }
 0x101   : > { %v651_v33 = vpack.c.bf16 %v623_v28, %v622_v27  ;;  %v642_v46 = vmax.f32 %v594_v38, 0.0  ;;  %v597_v47 = vadd.f32 %v1741_v43, %v2179_v57  ;;  %v588_v48 = vpop.f32.mrb[7].mxu1 }
 0x102   : > { %v650_v36 = vpack.c.bf16 %v621_v31, %v620_v30  ;;  %v1724_v37 = vpop.f32.mrb[8].mxu0  ;;  %v640_v51 = vmax.f32 %v586_v42, 0.0  ;;  %v589_v52 = vadd.f32 %v2179_v57, %v588_v48 }
 0x103   : > { %v530_v40 = vadd.f32 %v1724_v37, %v2179_v57  ;;  %v521_v41 = vpop.f32.mrb[9].mxu0  ;;  %v643_v54 = vmax.f32 %v597_v47, 0.0 }
 0x104   : > { %v522_v44 = vadd.f32 %v2179_v57, %v521_v41  ;;  %v1725_v45 = vpop.f32.mrb[10].mxu0  ;;  %1758 = vmatprep.mubr.msk.bf16.mxu1 %vm703_vm1, %v650_v36  ;;  %v641_v58 = vmax.f32 %v589_v52, 0.0 }
 0x105   : > { %v533_v49 = vadd.f32 %v1725_v45, %v2179_v57  ;;  %v524_v50 = vpop.f32.mrb[11].mxu0  ;;  %1759 = vmatmul.mubr.msk.bf16.gmra.mrb[16].mxu1 %vm703_vm1, %v651_v33  ;;  %v626_v55 = vmax.f32 %v530_v40, 0.0  ;;  %v661_v61 = vpack.c.bf16 %v643_v54, %v642_v46 }
 0x106   : > { %v525_v53 = vadd.f32 %v2179_v57, %v524_v50  ;;  %v624_v59 = vmax.f32 %v522_v44, 0.0  ;;  %v660_v63 = vpack.c.bf16 %v641_v58, %v640_v51  ;;  %v1744_v0 = vpop.f32.mrb[8].mxu1 }
 0x107   : > { %v627_v56 = vmax.f32 %v533_v49, 0.0  ;;  %v610_v3 = vadd.f32 %v1744_v0, %v2179_v57  ;;  %v601_v4 = vpop.f32.mrb[9].mxu1 }
 0x108   : > { %v625_v60 = vmax.f32 %v525_v53, 0.0  ;;  %v602_v7 = vadd.f32 %v2179_v57, %v601_v4  ;;  %v1745_v8 = vpop.f32.mrb[10].mxu1 }
 0x109   : > { %v653_v62 = vpack.c.bf16 %v627_v56, %v626_v55  ;;  %v646_v11 = vmax.f32 %v610_v3, 0.0  ;;  %v613_v12 = vadd.f32 %v1745_v8, %v2179_v57  ;;  %v604_v13 = vpop.f32.mrb[11].mxu1 }
 0x10a   : > { %v652_v1 = vpack.c.bf16 %v625_v60, %v624_v59  ;;  %v1728_v2 = vpop.f32.mrb[12].mxu0  ;;  %v644_v16 = vmax.f32 %v602_v7, 0.0  ;;  %v605_v17 = vadd.f32 %v2179_v57, %v604_v13 }
 0x10b   : > { %v546_v5 = vadd.f32 %v1728_v2, %v2179_v57  ;;  %v537_v6 = vpop.f32.mrb[13].mxu0  ;;  %v647_v19 = vmax.f32 %v613_v12, 0.0 }
 0x10c   : > { %v538_v9 = vadd.f32 %v2179_v57, %v537_v6  ;;  %v1729_v10 = vpop.f32.mrb[14].mxu0  ;;  %1762 = vmatprep.mubr.msk.bf16.mxu1 %vm703_vm1, %v652_v1  ;;  %v645_v22 = vmax.f32 %v605_v17, 0.0 }
 0x10d   : > { %v549_v14 = vadd.f32 %v1729_v10, %v2179_v57  ;;  %v540_v15 = vpop.f32.mrb[15].mxu0  ;;  %1763 = vmatmul.mubr.msk.bf16.gmra.mrb[20].mxu1 %vm703_vm1, %v653_v62  ;;  %v630_v20 = vmax.f32 %v546_v5, 0.0  ;;  %v663_v25 = vpack.c.bf16 %v647_v19, %v646_v11 }
 0x10e   : > { %v541_v18 = vadd.f32 %v2179_v57, %v540_v15  ;;  %v628_v23 = vmax.f32 %v538_v9, 0.0  ;;  %v662_v27 = vpack.c.bf16 %v645_v22, %v644_v16 }
 0x10f   : > { %v631_v21 = vmax.f32 %v549_v14, 0.0 }
 0x110   : > { %v629_v24 = vmax.f32 %v541_v18, 0.0 }
 0x111   : > { %v655_v26 = vpack.c.bf16 %v631_v21, %v630_v20 }
 0x112   : > { %v654_v28 = vpack.c.bf16 %v629_v24, %v628_v23  ;;  %v1732_v29 = vpop.f32.mrb[16].mxu0 }
 0x113   : > { %v562_v30 = vadd.f32 %v1732_v29, %v2179_v57  ;;  %v553_v31 = vpop.f32.mrb[17].mxu0 }
 0x114   : > { %v554_v33 = vadd.f32 %v2179_v57, %v553_v31  ;;  %v1733_v35 = vpop.f32.mrb[18].mxu0  ;;  %1766 = vmatprep.mubr.msk.bf16.mxu1 %vm703_vm1, %v654_v28 }
 0x115   : > { %v565_v36 = vadd.f32 %v1733_v35, %v2179_v57  ;;  %v556_v37 = vpop.f32.mrb[19].mxu0  ;;  %1767 = vmatmul.mubr.msk.bf16.gmra.mrb[24].mxu1 %vm703_vm1, %v655_v26  ;;  %v634_v39 = vmax.f32 %v562_v30, 0.0 }
 0x116   : > { %v557_v38 = vadd.f32 %v2179_v57, %v556_v37  ;;  %v632_v41 = vmax.f32 %v554_v33, 0.0  ;;  %v1927_v57 = vld [vmem:[%s2451_s5 + $0x18] sm:$0xff]  }
 0x117   : > { %v635_v40 = vmax.f32 %v565_v36, 0.0  ;;  %1792 = vmatprep.subr.bf16.mxu0 %v1927_v57 }
 0x118   : > { %v633_v42 = vmax.f32 %v557_v38, 0.0  ;;  %1793 = vmatpush3.bf16.msra.mxu0 %v1927_v57 }
 0x119   : > { %v657_v43 = vpack.c.bf16 %v635_v40, %v634_v39 }
 0x11a   : > { %v656_v44 = vpack.c.bf16 %v633_v42, %v632_v41 }
 0x11c   : > { %1770 = vmatprep.mubr.msk.bf16.mxu1 %vm703_vm1, %v656_v44 }
 0x11d   : > { %1771 = vmatmul.mubr.msk.bf16.gmra.mrb[28].mxu1 %vm703_vm1, %v657_v43 }
 0x11e   : > { %1774 = vmatprep.mubr.msk.bf16.mxu1 %vm703_vm1, %v2197_v34  ;;  %v2241_v34 = vld [vmem:[%s2450_s4] ss:$0 sm:$0xff] }
 0x125   : > { %1775 = vmatmul.mubr.msk.bf16.gmra.mrb[32].mxu1 %vm703_vm1, %v2195_v32 }
 0x126   : > { %1778 = vmatprep.mubr.msk.bf16.mxu1 %vm703_vm1, %v660_v63 }
 0x12d   : > { %1779 = vmatmul.mubr.msk.bf16.gmra.mrb[36].mxu1 %vm703_vm1, %v661_v61 }
 0x12e   : > { %1782 = vmatprep.mubr.msk.bf16.mxu1 %vm703_vm1, %v662_v27 }
 0x135   : > { %1783 = vmatmul.mubr.msk.bf16.gmra.mrb[40].mxu1 %vm703_vm1, %v663_v25 }
 0x1d0   : > { %v1756_v32 = vpop.f32.mrb[12].mxu1 }
 0x1d1   : > { %v795_v45 = vadd.f32 %v1756_v32, %v2241_v34  ;;  %v786_v46 = vpop.f32.mrb[13].mxu1 }
 0x1d2   : > { %v787_v47 = vadd.f32 %v2241_v34, %v786_v46  ;;  %v1757_v48 = vpop.f32.mrb[14].mxu1 }
 0x1d3   : > { %v798_v49 = vadd.f32 %v1757_v48, %v2241_v34  ;;  %v789_v50 = vpop.f32.mrb[15].mxu1  ;;  %v915_v52 = vmax.f32 %v795_v45, 0.0 }
 0x1d4   : > { %v790_v51 = vadd.f32 %v2241_v34, %v789_v50  ;;  %v913_v54 = vmax.f32 %v787_v47, 0.0 }
 0x1d5   : > { %v916_v53 = vmax.f32 %v798_v49, 0.0 }
 0x1d6   : > { %v914_v55 = vmax.f32 %v790_v51, 0.0 }
 0x1d7   : > { %v946_v56 = vpack.c.bf16 %v916_v53, %v915_v52 }
 0x1d8   : > { %v945_v58 = vpack.c.bf16 %v914_v55, %v913_v54  ;;  %v1760_v59 = vpop.f32.mrb[16].mxu1 }
 0x1d9   : > { %v811_v60 = vadd.f32 %v1760_v59, %v2241_v34  ;;  %v802_v61 = vpop.f32.mrb[17].mxu1 }
 0x1da   : > { %v803_v62 = vadd.f32 %v2241_v34, %v802_v61  ;;  %v1761_v63 = vpop.f32.mrb[18].mxu1  ;;  %1794 = vmatprep.mubr.msk.bf16.mxu0 %vm703_vm1, %v945_v58 }
 0x1db   : > { %v814_v0 = vadd.f32 %v1761_v63, %v2241_v34  ;;  %v805_v1 = vpop.f32.mrb[19].mxu1  ;;  %1795 = vmatmul.mubr.msk.bf16.vlgmr.msra.gmra.mrb[20].mxu0 %vm703_vm1, %v946_v56  ;;  %v919_v3 = vmax.f32 %v811_v60, 0.0 }
 0x1dc   : > { %v806_v2 = vadd.f32 %v2241_v34, %v805_v1  ;;  %v917_v5 = vmax.f32 %v803_v62, 0.0 }
 0x1dd   : > { %v920_v4 = vmax.f32 %v814_v0, 0.0 }
 0x1de   : > { %v918_v6 = vmax.f32 %v806_v2, 0.0 }
 0x1df   : > { %v948_v7 = vpack.c.bf16 %v920_v4, %v919_v3 }
 0x1e0   : > { %v947_v8 = vpack.c.bf16 %v918_v6, %v917_v5  ;;  %v1764_v9 = vpop.f32.mrb[20].mxu1 }
 0x1e1   : > { %v827_v10 = vadd.f32 %v1764_v9, %v2241_v34  ;;  %v818_v11 = vpop.f32.mrb[21].mxu1 }
 0x1e2   : > { %v819_v12 = vadd.f32 %v2241_v34, %v818_v11  ;;  %v1765_v13 = vpop.f32.mrb[22].mxu1  ;;  %1798 = vmatprep.mubr.msk.bf16.mxu0 %vm703_vm1, %v947_v8 }
 0x1e3   : > { %v830_v14 = vadd.f32 %v1765_v13, %v2241_v34  ;;  %v821_v15 = vpop.f32.mrb[23].mxu1  ;;  %1799 = vmatmul.mubr.msk.bf16.gmra.mrb[24].mxu0 %vm703_vm1, %v948_v7  ;;  %v923_v17 = vmax.f32 %v827_v10, 0.0 }
 0x1e4   : > { %v822_v16 = vadd.f32 %v2241_v34, %v821_v15  ;;  %v921_v19 = vmax.f32 %v819_v12, 0.0 }
 0x1e5   : > { %v924_v18 = vmax.f32 %v830_v14, 0.0 }
 0x1e6   : > { %v922_v20 = vmax.f32 %v822_v16, 0.0 }
 0x1e7   : > { %v950_v21 = vpack.c.bf16 %v924_v18, %v923_v17 }
 0x1e8   : > { %v949_v22 = vpack.c.bf16 %v922_v20, %v921_v19  ;;  %v1768_v23 = vpop.f32.mrb[24].mxu1 }
 0x1e9   : > { %v843_v24 = vadd.f32 %v1768_v23, %v2241_v34  ;;  %v834_v25 = vpop.f32.mrb[25].mxu1 }
 0x1ea   : > { %v835_v26 = vadd.f32 %v2241_v34, %v834_v25  ;;  %v1769_v27 = vpop.f32.mrb[26].mxu1  ;;  %1802 = vmatprep.mubr.msk.bf16.mxu0 %vm703_vm1, %v949_v22 }
 0x1eb   : > { %v846_v28 = vadd.f32 %v1769_v27, %v2241_v34  ;;  %v837_v29 = vpop.f32.mrb[27].mxu1  ;;  %1803 = vmatmul.mubr.msk.bf16.gmra.mrb[28].mxu0 %vm703_vm1, %v950_v21  ;;  %v927_v31 = vmax.f32 %v843_v24, 0.0 }
 0x1ec   : > { %v838_v30 = vadd.f32 %v2241_v34, %v837_v29  ;;  %v925_v35 = vmax.f32 %v835_v26, 0.0 }
 0x1ed   : > { %v928_v33 = vmax.f32 %v846_v28, 0.0 }
 0x1ee   : > { %v926_v36 = vmax.f32 %v838_v30, 0.0  ;;  %v2294_v30 = vld [vmem:[%s2453_s7] sm:$0x1] }
 0x1ef   : > { %v952_v37 = vpack.c.bf16 %v928_v33, %v927_v31  ;;  %1708 = vmatprep.mubr.msk.f32.mxu1 %vm406_vm0, %v2294_v30 }
 0x1f0   : > { %v951_v38 = vpack.c.bf16 %v926_v36, %v925_v35  ;;  %v1772_v39 = vpop.f32.mrb[28].mxu1 }
 0x1f1   : > { %v859_v40 = vadd.f32 %v1772_v39, %v2241_v34  ;;  %v850_v41 = vpop.f32.mrb[29].mxu1 }
 0x1f2   : > { %v851_v42 = vadd.f32 %v2241_v34, %v850_v41  ;;  %v1773_v43 = vpop.f32.mrb[30].mxu1  ;;  %1806 = vmatprep.mubr.msk.bf16.mxu0 %vm703_vm1, %v951_v38 }
 0x1f3   : > { %v862_v44 = vadd.f32 %v1773_v43, %v2241_v34  ;;  %v853_v57 = vpop.f32.mrb[31].mxu1  ;;  %1807 = vmatmul.mubr.msk.bf16.gmra.mrb[32].mxu0 %vm703_vm1, %v952_v37  ;;  %v931_v45 = vmax.f32 %v859_v40, 0.0 }
 0x1f4   : > { %v854_v32 = vadd.f32 %v2241_v34, %v853_v57  ;;  %v929_v47 = vmax.f32 %v851_v42, 0.0 }
 0x1f5   : > { %v932_v46 = vmax.f32 %v862_v44, 0.0 }
 0x1f6   : > { %v930_v48 = vmax.f32 %v854_v32, 0.0 }
 0x1f7   : > { %v954_v49 = vpack.c.bf16 %v932_v46, %v931_v45 }
 0x1f8   : > { %v953_v50 = vpack.c.bf16 %v930_v48, %v929_v47  ;;  %v1776_v51 = vpop.f32.mrb[32].mxu1 }
 0x1f9   : > { %v875_v52 = vadd.f32 %v1776_v51, %v2241_v34  ;;  %v866_v53 = vpop.f32.mrb[33].mxu1 }
 0x1fa   : > { %v867_v54 = vadd.f32 %v2241_v34, %v866_v53  ;;  %v1777_v55 = vpop.f32.mrb[34].mxu1  ;;  %1810 = vmatprep.mubr.msk.bf16.mxu0 %vm703_vm1, %v953_v50 }
 0x1fb   : > { %v935_v56 = vmax.f32 %v875_v52, 0.0  ;;  %v878_v58 = vadd.f32 %v1777_v55, %v2241_v34  ;;  %v869_v59 = vpop.f32.mrb[35].mxu1  ;;  %1811 = vmatmul.mubr.msk.bf16.gmra.mrb[36].mxu0 %vm703_vm1, %v954_v49 }
 0x1fc   : > { %v933_v60 = vmax.f32 %v867_v54, 0.0  ;;  %v870_v61 = vadd.f32 %v2241_v34, %v869_v59 }
 0x1fd   : > { %v936_v62 = vmax.f32 %v878_v58, 0.0 }
 0x1fe   : > { %v934_v63 = vmax.f32 %v870_v61, 0.0 }
 0x1ff   : > { %v956_v0 = vpack.c.bf16 %v936_v62, %v935_v56 }
 0x200   : > { %v955_v1 = vpack.c.bf16 %v934_v63, %v933_v60  ;;  %v1780_v2 = vpop.f32.mrb[36].mxu1 }
 0x201   : > { %v891_v3 = vadd.f32 %v1780_v2, %v2241_v34  ;;  %v882_v4 = vpop.f32.mrb[37].mxu1 }
 0x202   : > { %1814 = vmatprep.mubr.msk.bf16.mxu0 %vm703_vm1, %v955_v1  ;;  %v883_v5 = vadd.f32 %v2241_v34, %v882_v4  ;;  %v1781_v6 = vpop.f32.mrb[38].mxu1 }
 0x203   : > { %1815 = vmatmul.mubr.msk.bf16.gmra.mrb[40].mxu0 %vm703_vm1, %v956_v0  ;;  %v939_v7 = vmax.f32 %v891_v3, 0.0  ;;  %v894_v8 = vadd.f32 %v1781_v6, %v2241_v34  ;;  %v885_v9 = vpop.f32.mrb[39].mxu1 }
 0x204   : > { %v937_v10 = vmax.f32 %v883_v5, 0.0  ;;  %v886_v11 = vadd.f32 %v2241_v34, %v885_v9 }
 0x205   : > { %v940_v12 = vmax.f32 %v894_v8, 0.0 }
 0x206   : > { %v938_v13 = vmax.f32 %v886_v11, 0.0 }
 0x207   : > { %v958_v14 = vpack.c.bf16 %v940_v12, %v939_v7 }
 0x208   : > { %v957_v15 = vpack.c.bf16 %v938_v13, %v937_v10  ;;  %v1784_v16 = vpop.f32.mrb[40].mxu1 }
 0x209   : > { %v907_v17 = vadd.f32 %v1784_v16, %v2241_v34  ;;  %v898_v18 = vpop.f32.mrb[41].mxu1 }
 0x20a   : > { %1818 = vmatprep.mubr.msk.bf16.mxu0 %vm703_vm1, %v957_v15  ;;  %v899_v19 = vadd.f32 %v2241_v34, %v898_v18  ;;  %v1785_v20 = vpop.f32.mrb[42].mxu1 }
 0x20b   : > { %1819 = vmatmul.mubr.msk.bf16.gmra.mrb[44].mxu0 %vm703_vm1, %v958_v14  ;;  %v943_v21 = vmax.f32 %v907_v17, 0.0  ;;  %v910_v22 = vadd.f32 %v1785_v20, %v2241_v34  ;;  %v901_v23 = vpop.f32.mrb[43].mxu1 }
 0x20c   : > { %v941_v24 = vmax.f32 %v899_v19, 0.0  ;;  %v902_v25 = vadd.f32 %v2241_v34, %v901_v23  ;;  %v2301_v34 = vld [vmem:[%s2452_s6] ss:$0 sm:$0xff] }
 0x20d   : > { %v944_v26 = vmax.f32 %v910_v22, 0.0 }
 0x20e   : > { %v942_v27 = vmax.f32 %v902_v25, 0.0 }
 0x20f   : > { %v960_v28 = vpack.c.bf16 %v944_v26, %v943_v21 }
 0x210   : > { %v959_v29 = vpack.c.bf16 %v942_v27, %v941_v24 }
 0x212   : > { %1822 = vmatprep.mubr.msk.bf16.mxu0 %vm703_vm1, %v959_v29 }
 0x213   : > { %1823 = vmatmul.mubr.msk.bf16.gmra.mrb[48].mxu0 %vm703_vm1, %v960_v28 }
 0x2ae   : > { %v1796_v31 = vpop.f32.mrb[20].mxu0 }
 0x2af   : > { %v1091_v33 = vadd.f32 %v1796_v31, %v2301_v34  ;;  %v1082_v35 = vpop.f32.mrb[21].mxu0 }
 0x2b0   : > { %v1083_v36 = vadd.f32 %v2301_v34, %v1082_v35  ;;  %v1797_v37 = vpop.f32.mrb[22].mxu0 }
 0x2b1   : > { %v1094_v38 = vadd.f32 %v1797_v37, %v2301_v34  ;;  %v1085_v39 = vpop.f32.mrb[23].mxu0  ;;  %v1211_v41 = vmax.f32 %v1091_v33, 0.0 }
 0x2b2   : > { %v1086_v40 = vadd.f32 %v2301_v34, %v1085_v39  ;;  %v1209_v43 = vmax.f32 %v1083_v36, 0.0 }
 0x2b3   : > { %v1212_v42 = vmax.f32 %v1094_v38, 0.0 }
 0x2b4   : > { %v1210_v44 = vmax.f32 %v1086_v40, 0.0 }
 0x2b5   : > { %v2307_v57 = vpack.c.bf16 %v1212_v42, %v1211_v41 }
 0x2b6   : > { %v2309_v32 = vpack.c.bf16 %v1210_v44, %v1209_v43  ;;  %v1800_v45 = vpop.f32.mrb[24].mxu0 }
 0x2b7   : > { %v1107_v46 = vadd.f32 %v1800_v45, %v2301_v34  ;;  %v1098_v47 = vpop.f32.mrb[25].mxu0 }
 0x2b8   : > { %v1099_v48 = vadd.f32 %v2301_v34, %v1098_v47  ;;  %v1801_v49 = vpop.f32.mrb[26].mxu0 }
 0x2b9   : > { %v1110_v50 = vadd.f32 %v1801_v49, %v2301_v34  ;;  %v1101_v51 = vpop.f32.mrb[27].mxu0  ;;  %v1215_v53 = vmax.f32 %v1107_v46, 0.0 }
 0x2ba   : > { %v1102_v52 = vadd.f32 %v2301_v34, %v1101_v51  ;;  %v1213_v55 = vmax.f32 %v1099_v48, 0.0 }
 0x2bb   : > { %v1216_v54 = vmax.f32 %v1110_v50, 0.0 }
 0x2bc   : > { %v1214_v56 = vmax.f32 %v1102_v52, 0.0 }
 0x2bd   : > { %v2315_v58 = vpack.c.bf16 %v1216_v54, %v1215_v53 }
 0x2be   : > { %v2317_v59 = vpack.c.bf16 %v1214_v56, %v1213_v55  ;;  %v1804_v60 = vpop.f32.mrb[28].mxu0 }
 0x2bf   : > { %v1123_v61 = vadd.f32 %v1804_v60, %v2301_v34  ;;  %v1114_v62 = vpop.f32.mrb[29].mxu0 }
 0x2c0   : > { %v1115_v63 = vadd.f32 %v2301_v34, %v1114_v62  ;;  %v1805_v0 = vpop.f32.mrb[30].mxu0 }
 0x2c1   : > { %v1126_v1 = vadd.f32 %v1805_v0, %v2301_v34  ;;  %v1117_v2 = vpop.f32.mrb[31].mxu0  ;;  %v1219_v4 = vmax.f32 %v1123_v61, 0.0 }
 0x2c2   : > { %v1118_v3 = vadd.f32 %v2301_v34, %v1117_v2  ;;  %v1217_v6 = vmax.f32 %v1115_v63, 0.0 }
 0x2c3   : > { %v1220_v5 = vmax.f32 %v1126_v1, 0.0 }
 0x2c4   : > { %v1218_v7 = vmax.f32 %v1118_v3, 0.0 }
 0x2c5   : > { %v2323_v8 = vpack.c.bf16 %v1220_v5, %v1219_v4 }
 0x2c6   : > { %v2325_v9 = vpack.c.bf16 %v1218_v7, %v1217_v6  ;;  %v1808_v10 = vpop.f32.mrb[32].mxu0 }
 0x2c7   : > { %v1139_v11 = vadd.f32 %v1808_v10, %v2301_v34  ;;  %v1130_v12 = vpop.f32.mrb[33].mxu0 }
 0x2c8   : > { %v1131_v13 = vadd.f32 %v2301_v34, %v1130_v12  ;;  %v1809_v14 = vpop.f32.mrb[34].mxu0 }
 0x2c9   : > { %v1142_v15 = vadd.f32 %v1809_v14, %v2301_v34  ;;  %v1133_v16 = vpop.f32.mrb[35].mxu0  ;;  %v1223_v18 = vmax.f32 %v1139_v11, 0.0 }
 0x2ca   : > { %v1134_v17 = vadd.f32 %v2301_v34, %v1133_v16  ;;  %v1221_v20 = vmax.f32 %v1131_v13, 0.0 }
 0x2cb   : > { %v1224_v19 = vmax.f32 %v1142_v15, 0.0 }
 0x2cc   : > { %v1222_v21 = vmax.f32 %v1134_v17, 0.0 }
 0x2cd   : > { %v2331_v22 = vpack.c.bf16 %v1224_v19, %v1223_v18 }
 0x2ce   : > { %v2333_v23 = vpack.c.bf16 %v1222_v21, %v1221_v20  ;;  %v1812_v24 = vpop.f32.mrb[36].mxu0 }
 0x2cf   : > { %v1155_v25 = vadd.f32 %v1812_v24, %v2301_v34  ;;  %v1146_v26 = vpop.f32.mrb[37].mxu0 }
 0x2d0   : > { %v1147_v27 = vadd.f32 %v2301_v34, %v1146_v26  ;;  %v1813_v28 = vpop.f32.mrb[38].mxu0 }
 0x2d1   : > { %v1158_v29 = vadd.f32 %v1813_v28, %v2301_v34  ;;  %v1149_v31 = vpop.f32.mrb[39].mxu0  ;;  %v1227_v35 = vmax.f32 %v1155_v25, 0.0 }
 0x2d2   : > { %v1150_v33 = vadd.f32 %v2301_v34, %v1149_v31  ;;  %v1225_v37 = vmax.f32 %v1147_v27, 0.0 }
 0x2d3   : > { %v1228_v36 = vmax.f32 %v1158_v29, 0.0 }
 0x2d4   : > { %v1226_v38 = vmax.f32 %v1150_v33, 0.0 }
 0x2d5   : > { %v1832_v39 = vpack.c.bf16 %v1228_v36, %v1227_v35 }
 0x2d6   : > { %v1826_v41 = vpack.c.bf16 %v1226_v38, %v1225_v37  ;;  %v1816_v42 = vpop.f32.mrb[40].mxu0 }
 0x2d7   : > { %v1171_v43 = vadd.f32 %v1816_v42, %v2301_v34  ;;  %v1162_v44 = vpop.f32.mrb[41].mxu0 }
 0x2d8   : > { %v1163_v45 = vadd.f32 %v2301_v34, %v1162_v44  ;;  %v1817_v46 = vpop.f32.mrb[42].mxu0  ;;  %1828 = vmatprep.subr.msk.bf16.mxu1 %vm2341_vm2, %v1826_v41 }
 0x2d9   : > { %v1174_v47 = vadd.f32 %v1817_v46, %v2301_v34  ;;  %v1165_v48 = vpop.f32.mrb[43].mxu0  ;;  %1831 = vmatpush3.bf16.xpose.msk.msra.mxu1 %vm2341_vm2, %v2309_v32  ;;  %v1231_v50 = vmax.f32 %v1171_v43, 0.0 }
 0x2da   : > { %v1166_v49 = vadd.f32 %v2301_v34, %v1165_v48  ;;  %1834 = vmatprep.subr.msk.bf16.mxu1 %vm2341_vm2, %v1832_v39  ;;  %v1229_v52 = vmax.f32 %v1163_v45, 0.0 }
 0x2db   : > { %v1232_v51 = vmax.f32 %v1174_v47, 0.0 }
 0x2dc   : > { %v1230_v53 = vmax.f32 %v1166_v49, 0.0 }
 0x2dd   : > { %v1844_v54 = vpack.c.bf16 %v1232_v51, %v1231_v50 }
 0x2de   : > { %v1838_v55 = vpack.c.bf16 %v1230_v53, %v1229_v52  ;;  %v1820_v56 = vpop.f32.mrb[44].mxu0 }
 0x2df   : > { %v1187_v60 = vadd.f32 %v1820_v56, %v2301_v34  ;;  %v1178_v61 = vpop.f32.mrb[45].mxu0 }
 0x2e0   : > { %v1179_v62 = vadd.f32 %v2301_v34, %v1178_v61  ;;  %v1821_v63 = vpop.f32.mrb[46].mxu0 }
 0x2e1   : > { %1837 = vmatpush3.bf16.xpose.msk.msra.mxu1 %vm2341_vm2, %v2307_v57  ;;  %v1235_v32 = vmax.f32 %v1187_v60, 0.0  ;;  %v1190_v0 = vadd.f32 %v1821_v63, %v2301_v34  ;;  %v1181_v1 = vpop.f32.mrb[47].mxu0 }
 0x2e2   : > { %1840 = vmatprep.subr.msk.bf16.mxu1 %vm2341_vm2, %v1838_v55  ;;  %v1233_v2 = vmax.f32 %v1179_v62, 0.0  ;;  %v1182_v3 = vadd.f32 %v2301_v34, %v1181_v1 }
 0x2e3   : > { %v1236_v4 = vmax.f32 %v1190_v0, 0.0 }
 0x2e4   : > { %v1234_v5 = vmax.f32 %v1182_v3, 0.0 }
 0x2e5   : > { %v1856_v6 = vpack.c.bf16 %v1236_v4, %v1235_v32 }
 0x2e6   : > { %v1850_v7 = vpack.c.bf16 %v1234_v5, %v1233_v2  ;;  %v1824_v10 = vpop.f32.mrb[48].mxu0 }
 0x2e7   : > { %v1203_v11 = vadd.f32 %v1824_v10, %v2301_v34  ;;  %v1194_v12 = vpop.f32.mrb[49].mxu0 }
 0x2e8   : > { %v1195_v57 = vadd.f32 %v2301_v34, %v1194_v12  ;;  %v1825_v13 = vpop.f32.mrb[50].mxu0 }
 0x2e9   : > { %1843 = vmatpush3.bf16.xpose.msk.msra.mxu1 %vm2341_vm2, %v2317_v59  ;;  %v1239_v14 = vmax.f32 %v1203_v11, 0.0  ;;  %v1206_v15 = vadd.f32 %v1825_v13, %v2301_v34  ;;  %v1197_v16 = vpop.f32.mrb[51].mxu0  ;;  %v1420_v59 = vlaneseq }
 0x2ea   : > { %1846 = vmatprep.subr.msk.bf16.mxu1 %vm2341_vm2, %v1844_v54  ;;  %v1237_v17 = vmax.f32 %v1195_v57, 0.0  ;;  %v1198_v18 = vadd.f32 %v2301_v34, %v1197_v16  ;;  %v1992_v34 = vmov 1966171168  }
 0x2eb   : > { %v1240_v19 = vmax.f32 %v1206_v15, 0.0  ;;  %v1421_v25 = vshrl.u32 %v1420_v59, 7  ;;  %vm1434_vm3 = vcmp.lt.s32.totalorder %v1420_v59, 256 }
 0x2ec   : > { %v1238_v20 = vmax.f32 %v1198_v18, 0.0 }
 0x2ed   : > { %v1868_v21 = vpack.c.bf16 %v1240_v19, %v1239_v14 }
 0x2ee   : > { %v1862_v24 = vpack.c.bf16 %v1238_v20, %v1237_v17 }
 0x2f1   : > { %1849 = vmatpush3.bf16.xpose.msk.msra.mxu1 %vm2341_vm2, %v2315_v58  ;;  %v1418_v58 = vunpack.c.l.s4 %v1992_v34 }
 0x2f2   : > { %1852 = vmatprep.subr.msk.bf16.mxu1 %vm2341_vm2, %v1850_v7 }
 0x2f9   : > { %1855 = vmatpush3.bf16.xpose.msk.msra.mxu1 %vm2341_vm2, %v2325_v9  ;;  %v1419_v9 = vunpack.c.0.s8 %v1418_v58 }
 0x2fa   : > { %1858 = vmatprep.subr.msk.bf16.mxu1 %vm2341_vm2, %v1856_v6 }
 0x2fb   : > { %v1422_v29 = vsub.s32 %v1419_v9, %v1421_v25 }
 0x301   : > { %1861 = vmatpush3.bf16.xpose.msk.msra.mxu1 %vm2341_vm2, %v2323_v8  ;;  %v1243_v8 = vstv %s1242_s30 }
 0x302   : > { %1864 = vmatprep.subr.msk.bf16.mxu1 %vm2341_vm2, %v1862_v24 }
 0x309   : > { %1867 = vmatpush3.bf16.xpose.msk.msra.mxu1 %vm2341_vm2, %v2333_v23 }
 0x30a   : > { %1870 = vmatprep.subr.msk.bf16.mxu1 %vm2341_vm2, %v1868_v21 }
 0x311   : > { %1873 = vmatpush3.bf16.xpose.msk.msra.mxu1 %vm2341_vm2, %v2331_v22 }
 0x318   : > { %1709 = vmatmul.mubr.msk.f32.vlgmr.msra.gmra.mrb[44].mxu1 %vm406_vm0, %v2294_v30 }
 0x3eb   : > { %v1409_v23 = vpop.f32.mrb[44].mxu1 }
 0x3ec   : > { %v1410_v26 = vadd.f32 %v1409_v23, %v1243_v8  ;;  %v1411_v27 = vpop.f32.mrb[45].mxu1 }
 0x3ed   : > { %v1412_v28 = vadd.f32 %v1411_v27, %v1243_v8 }
 0x3ef   : > { %v1416_v22 = vcombine.low %v1410_v26, %v1412_v28 }
 0x3f1   : > { %v1423_v30 = vrot.slane %v1416_v22, %v1422_v29 }
 0x3f3   : > { %v1430_v31 = vrot.slane %v1423_v30, %v1422_v29 }
 0x3f5   : > { %1436 = vst.msk [vmem:[%s327_s15] sm:$0x3] %vm1434_vm3, %v1430_v31 }
 0x3f6   : > { %1941 = shalt.err (!%p1938_p3)
}
 0x3f7   : > { %s1942_s24 = scalar_lea.hbm %s2404_s23, 32  ;;  %s1946_s8 = scalar_lea.hbm %s2455_s9, 64 }
 0x3f8   : > { %p1943_p4 = scmp.ne.s32.totalorder %s2404_s23, %s1942_s24  ;;  %p1947_p9 = scmp.lt.u32.totalorder %s2404_s23, %s2455_s9 }
 0x3f9   : > { %p1948_p10 = scmp.lt.u32.totalorder %s1946_s8, %s1942_s24  ;;  %p1950_p12 = scmp.lt.u32.totalorder %s1942_s24, %s2404_s23 }
 0x3fa   : > { %p1944_p7 = pnand %p1943_p4, %p2082_p5 }
 0x3fb   : > { %p1949_p11 = por %p1948_p10, %p1947_p9 }
 0x3fc   : > { %p1945_p8 = pneg %p1944_p7 }
 0x3fd   : > { %p1951_p13 = por %p1950_p12, %p1949_p11 }
 0x3ff   : > { %p1952_p0 = pnand %p1951_p13, %p1945_p8 }
 0x401   : > { %1955 = shalt.err (!%p1952_p0)
}
 0x402   : > { %1878 = dma.vmem_to_hbm [thread:$0]  (%p2082_p5), %s2406_s17, 32, %s2404_s23, %s1438_s25  }
 0x403 PF: > { %p1884_p1 = scmp.ge.s32.totalorder %s1990_s14, 2  ;;  %s1464_s22 = sand.u32 1, %s1978_s11  }
 0x404   : > { %s1465_s26 = scalar_lea.sflag [#allocation4], %s1464_s22 }
 0x405   : > { %p1881_p2 = pnand %p1884_p1, %p2086_p6 }
 0x407   : > { %1973 = dma.done.wait (!%p1881_p2), %s1465_s26, 32  }
 0x408   : > { %1975 = vsyncadd (!%p1881_p2), %s1465_s26, 4294967264  ;;  %p20_p3 = scmp.ge.s32.totalorder %s2070_s16, 4   ;;  %s2460_s11 = smov %s1982_s12 }
 0x409   : > { %s2461_s12 = smov %s1986_s13  ;;  %s2462_s13 = smov %s2080_s19 }
 0x40a   : > { %s2463_s14 = smov %s2070_s16  ;;  %22 = sbr.rel (!%p20_p3) target bundleno = 5 (0x5), region = 91 }
 0x411   :  { %1470 = vsyncpa [#allocation4], 1 }
 0x412   :  { %1472 = vsyncpa [#allocation4 + $0x1], 1 }

</bundles_post_ra>
